<compile_context>
chip_gen: v7x
topology: tpu7x:2x2x1
jax: 0.10.0
libtpu: 0.0.40
codegen_flags: <defaults>
</compile_context>

<pallas_src>
import functools
import math

import jax
import jax.numpy as jnp
from jax.experimental import pallas as pl
from jax.experimental.pallas import tpu as pltpu

_HALF_LOG_2PI = 0.5 * math.log(2.0 * math.pi)


def _round_up(x, m):
    return ((x + m - 1) // m) * m


# ----------------------------------------------------------------------------
# Kernel
# ----------------------------------------------------------------------------
def _policy_kernel(
    xe_ref,                 # (TILE_B, n_state + n_action) bf16 slab [x | eps]
    w1_ref, b1_ref,
    w2_ref, b2_ref,
    w3_ref, b3_ref,
    w4_ref, b4_ref,
    w5_ref, b5_ref,
    whead_ref, bhead_ref,   # fused [mu | std] head
    out_ref,                # (TILE_B, out_width) packed output
    *, qhigh, std_min, std_max, n_state, n_action, out_width,
):
    def linear(h, w_ref, b_ref):
        # matmul inputs in the (bf16) weight dtype, accumulate in f32 on MXU
        acc = jnp.dot(h.astype(w_ref.dtype), w_ref[...],
                      preferred_element_type=jnp.float32)
        return acc + b_ref[...].astype(jnp.float32)

    xe = xe_ref[...]
    x = xe[:, :n_state]                                   # stays bf16
    eps = xe[:, n_state:n_state + n_action].astype(jnp.float32)

    h = jnp.maximum(linear(x, w1_ref, b1_ref), 0.0)
    h = jnp.maximum(linear(h, w2_ref, b2_ref), 0.0)
    h = jnp.maximum(linear(h, w3_ref, b3_ref), 0.0)
    h = jnp.maximum(linear(h, w4_ref, b4_ref), 0.0)
    h = jnp.maximum(linear(h, w5_ref, b5_ref), 0.0)

    head = linear(h, whead_ref, bhead_ref)        # (TILE_B, 2*n_action), f32
    mu = head[:, :n_action]
    std_pre = head[:, n_action:]

    # softplus (numerically stable), then clamp -> std in [std_min, std_max]
    std = jnp.maximum(std_pre, 0.0) + jnp.log1p(jnp.exp(-jnp.abs(std_pre)))
    std = jnp.clip(std, std_min, std_max)

    # Normal(mu, std).rsample() with externally supplied eps ~ N(0, 1)
    z = mu + std * eps

    # Normal(mu, std).log_prob(z); (z - mu)/std == eps exactly by construction
    log_prob = -0.5 * eps * eps - jnp.log(std) - _HALF_LOG_2PI

    # tanh squash and scale by qhigh (qdhigh is None in this configuration)
    action = jnp.tanh(z) * qhigh

    # TODO(synk): if profiling shows the single-slot EUP binding, repack the
    # (TILE_B, n_action) operands of this transcendental chain into a
    # lane-dense layout before the chain (measure: the relayout costs XLU).
    # NOTE: matches the PyTorch code exactly: correction uses tanh of the
    # *scaled* action, and std_min as the additive epsilon.
    log_prob = log_prob - jnp.log(1.0 - jnp.square(jnp.tanh(action)) + std_min)
    lp_sum = jnp.sum(log_prob, axis=1, keepdims=True)

    # Packed output: zero-fill once (only if wider than the payload), then two
    # narrow stores — no 3-piece concatenate.
    if out_width > n_action + 1:
        out_ref[...] = jnp.zeros_like(out_ref)
    out_ref[:, :n_action] = action
    out_ref[:, n_action:n_action + 1] = lp_sum


# ----------------------------------------------------------------------------
# Wrapper
# ----------------------------------------------------------------------------
def policy_forward(x, params, eps, *, qhigh, std_min=1e-4, std_max=1.0,
                   max_tile_b=512, weight_dtype=jnp.bfloat16, out_width=128):
    """params: flat tuple (w1, b1, ..., w5, b5, wmu, bmu, wstd, bstd) with
    weights as [in, out] and biases as [1, out]."""
    batch, n_state = x.shape
    n_action = eps.shape[1]
    # out_width=128 (default): lane-dense wide slab, best on v6e/v7x.
    # out_width=n_action+1: narrow writeback, worth benchmarking on v5e.
    out_width = max(out_width, n_action + 1)

    (w1, b1, w2, b2, w3, b3, w4, b4, w5, b5, wmu, bmu, wstd, bstd) = params

    # Zero-pad layer-1's output dim / layer-2's contraction dim to a multiple
    # of 128 so intermediates are lane-dense.  Bit-identical: padded columns
    # (and the matching padded rows of w2) contribute exactly zero.
    fc1 = w1.shape[1]
    fc1_pad = _round_up(fc1, 128)
    if fc1_pad != fc1:
        w1 = jnp.pad(w1, ((0, 0), (0, fc1_pad - fc1)))
        b1 = jnp.pad(b1, ((0, 0), (0, fc1_pad - fc1)))
        w2 = jnp.pad(w2, ((0, fc1_pad - fc1), (0, 0)))

    # Fuse the two tiny heads into one matmul; cast weights once to bf16.
    whead = jnp.concatenate([wmu, wstd], axis=1)
    bhead = jnp.concatenate([bmu, bstd], axis=1)
    weights = [w.astype(weight_dtype) for w in (w1, w2, w3, w4, w5, whead)]
    biases = [b.astype(jnp.float32) for b in (b1, b2, b3, b4, b5, bhead)]

    # Batch tiling: pad batch to a multiple of 16 (bf16 sublane packing of the
    # cast LHS).  Megacore-aware tile pick: aim for >= 2 grid steps so v7x's
    # two TensorCores both get work; the extra step is ~free on v5e/v6e.
    pad_b = _round_up(batch, 16)
    tile_b = min(max_tile_b, max(16, _round_up(pl.cdiv(pad_b, 2), 16)))
    pad_b = _round_up(pad_b, tile_b)
    grid = (pad_b // tile_b,)

    # Single streamed input slab per step: [x | eps], cast once to bf16.
    xe = jnp.concatenate(
        [x.astype(weight_dtype), eps.astype(weight_dtype)], axis=1)
    if pad_b != batch:
        xe = jnp.pad(xe, ((0, pad_b - batch), (0, 0)))

    const_map = lambda i: (0, 0)
    batch_map = lambda i: (i, 0)

    in_specs = [pl.BlockSpec((tile_b, n_state + n_action), batch_map)]
    flat_inputs = [xe]
    for w, b in zip(weights, biases):
        in_specs.append(pl.BlockSpec(w.shape, const_map))   # weights resident
        in_specs.append(pl.BlockSpec(b.shape, const_map))
        flat_inputs += [w, b]

    out_spec = pl.BlockSpec((tile_b, out_width), batch_map)

    kernel = functools.partial(
        _policy_kernel,
        qhigh=float(qhigh),
        std_min=float(std_min),
        std_max=float(std_max),
        n_state=n_state,
        n_action=n_action,
        out_width=out_width,
    )

    # Advisory cost estimate for the XLA scheduler.
    dims = [w.shape[1] for w in (w1, w2, w3, w4, w5)]
    sizes = [n_state] + dims + [2 * n_action]
    flops = 2 * pad_b * sum(a * b for a, b in zip(sizes[:-1], sizes[1:]))
    transcendentals = pad_b * 6 * n_action
    wbytes = jnp.dtype(weight_dtype).itemsize
    bytes_accessed = (
        sum(int(w.size) * wbytes for w in weights)
        + sum(int(b.size) * 4 for b in biases)
        + pad_b * ((n_state + n_action) * wbytes + out_width * 4)
    )

    out = pl.pallas_call(
        kernel,
        out_shape=jax.ShapeDtypeStruct((pad_b, out_width), jnp.float32),
        grid=grid,
        in_specs=in_specs,
        out_specs=out_spec,
        compiler_params=pltpu.CompilerParams(
            dimension_semantics=("parallel",)),
        cost_estimate=pl.CostEstimate(
            flops=flops,
            transcendentals=transcendentals,
            bytes_accessed=bytes_accessed),
    )(*flat_inputs)

    action = out[:batch, :n_action]
    log_prob = out[:batch, n_action:n_action + 1]
    return action, log_prob


# ----------------------------------------------------------------------------
# Deterministic parameter init (mimics nn.Linear default: U(-1/sqrt(in), ..))
# ----------------------------------------------------------------------------
def init_params(key, n_state, n_action, dims=(64, 128, 256, 256, 256)):
    sizes = [n_state, *dims]
    params = []
    layer_dims = list(zip(sizes[:-1], sizes[1:])) + [
        (sizes[-1], n_action),  # mu head
        (sizes[-1], n_action),  # std head
    ]
    for fan_in, fan_out in layer_dims:
        key, kw, kb = jax.random.split(key, 3)
        bound = 1.0 / jnp.sqrt(float(fan_in))
        w = jax.random.uniform(kw, (fan_in, fan_out), jnp.float32, -bound, bound)
        b = jax.random.uniform(kb, (1, fan_out), jnp.float32, -bound, bound)
        params += [w, b]
    return tuple(params)


# ----------------------------------------------------------------------------
if __name__ == "__main__":
    key = jax.random.PRNGKey(0)

    batch = 4
    n_state = 8
    n_action = 4
    qhigh = 2.0  # scalar action scale; qdhigh=None path
    # TODO(synk): qdhigh is not None path (split qhigh/qdhigh scaling per
    # action slice) is not implemented; the module's default configuration
    # (qdhigh=None) is what this kernel covers.

    k_params, k_x, k_eps = jax.random.split(key, 3)
    params = init_params(k_params, n_state, n_action)

    x = jax.random.normal(k_x, (batch, n_state), jnp.float32)
    eps = jax.random.normal(k_eps, (batch, n_action), jnp.float32)

    action, log_prob = policy_forward(
        x, params, eps, qhigh=qhigh, std_min=1e-4, std_max=1.0
    )
    jax.block_until_ready((action, log_prob))

    assert action.shape == (batch, n_action)
    assert log_prob.shape == (batch, 1)
    assert bool(jnp.all(jnp.isfinite(action)))
    assert bool(jnp.all(jnp.isfinite(log_prob)))
    assert bool(jnp.all(jnp.abs(action) <= qhigh + 1e-5))

    print("KERNEL_OK")
</pallas_src>

<mosaic_0001>
module attributes {stable_mosaic.version = 11 : i64} {
  func.func @_policy_kernel(%arg0: i32, %arg1: memref<16x12xbf16, #tpu.memory_space<vmem>>, %arg2: memref<8x128xbf16, #tpu.memory_space<vmem>>, %arg3: memref<1x128xf32, #tpu.memory_space<vmem>>, %arg4: memref<128x128xbf16, #tpu.memory_space<vmem>>, %arg5: memref<1x128xf32, #tpu.memory_space<vmem>>, %arg6: memref<128x256xbf16, #tpu.memory_space<vmem>>, %arg7: memref<1x256xf32, #tpu.memory_space<vmem>>, %arg8: memref<256x256xbf16, #tpu.memory_space<vmem>>, %arg9: memref<1x256xf32, #tpu.memory_space<vmem>>, %arg10: memref<256x256xbf16, #tpu.memory_space<vmem>>, %arg11: memref<1x256xf32, #tpu.memory_space<vmem>>, %arg12: memref<256x8xbf16, #tpu.memory_space<vmem>>, %arg13: memref<1x8xf32, #tpu.memory_space<vmem>>, %arg14: memref<16x128xf32, #tpu.memory_space<vmem>>) attributes {dimension_semantics = [#tpu.dimension_semantics<parallel>], iteration_bounds = array<i64: 1>, scalar_prefetch = 0 : i64, scratch_operands = 0 : i64, tpu.core_type = #tpu.core_type<tc>, window_params = [{transform_indices = @transform_0, window_bounds = array<i64: 16, 12>}, {pipeline_mode = #tpu.pipeline_mode<synchronous>, transform_indices = @transform_1, window_bounds = array<i64: 8, 128>}, {pipeline_mode = #tpu.pipeline_mode<synchronous>, transform_indices = @transform_2, window_bounds = array<i64: 1, 128>}, {pipeline_mode = #tpu.pipeline_mode<synchronous>, transform_indices = @transform_3, window_bounds = array<i64: 128, 128>}, {pipeline_mode = #tpu.pipeline_mode<synchronous>, transform_indices = @transform_4, window_bounds = array<i64: 1, 128>}, {pipeline_mode = #tpu.pipeline_mode<synchronous>, transform_indices = @transform_5, window_bounds = array<i64: 128, 256>}, {pipeline_mode = #tpu.pipeline_mode<synchronous>, transform_indices = @transform_6, window_bounds = array<i64: 1, 256>}, {pipeline_mode = #tpu.pipeline_mode<synchronous>, transform_indices = @transform_7, window_bounds = array<i64: 256, 256>}, {pipeline_mode = #tpu.pipeline_mode<synchronous>, transform_indices = @transform_8, window_bounds = array<i64: 1, 256>}, {pipeline_mode = #tpu.pipeline_mode<synchronous>, transform_indices = @transform_9, window_bounds = array<i64: 256, 256>}, {pipeline_mode = #tpu.pipeline_mode<synchronous>, transform_indices = @transform_10, window_bounds = array<i64: 1, 256>}, {pipeline_mode = #tpu.pipeline_mode<synchronous>, transform_indices = @transform_11, window_bounds = array<i64: 256, 8>}, {pipeline_mode = #tpu.pipeline_mode<synchronous>, transform_indices = @transform_12, window_bounds = array<i64: 1, 8>}, {transform_indices = @transform_13, window_bounds = array<i64: 16, 128>}]} {
    %c0 = arith.constant 0 : index
    %c0_0 = arith.constant 0 : index
    %0 = vector.load %arg1[%c0, %c0_0] : memref<16x12xbf16, #tpu.memory_space<vmem>>, vector<16x12xbf16>
    %1 = vector.extract_strided_slice %0 {offsets = [0, 0], sizes = [16, 8], strides = [1, 1]} : vector<16x12xbf16> to vector<16x8xbf16>
    %2 = vector.extract_strided_slice %0 {offsets = [0, 8], sizes = [16, 4], strides = [1, 1]} : vector<16x12xbf16> to vector<16x4xbf16>
    %3 = arith.extf %2 : vector<16x4xbf16> to vector<16x4xf32>
    %c0_1 = arith.constant 0 : index
    %c0_2 = arith.constant 0 : index
    %4 = vector.load %arg2[%c0_1, %c0_2] : memref<8x128xbf16, #tpu.memory_space<vmem>>, vector<8x128xbf16>
    %cst = arith.constant dense<0.000000e+00> : vector<16x128xf32>
    %5 = tpu.matmul %1, %4, %cst {dimension_numbers = #tpu.dot_dimension_numbers<[1], [0], [0], [1], [0, 0, 1, 1], [], []>} : vector<16x8xbf16>, vector<8x128xbf16>, vector<16x128xf32> -> vector<16x128xf32>
    %c0_3 = arith.constant 0 : index
    %c0_4 = arith.constant 0 : index
    %6 = vector.load %arg3[%c0_3, %c0_4] : memref<1x128xf32, #tpu.memory_space<vmem>>, vector<1x128xf32>
    %7 = vector.broadcast %6 : vector<1x128xf32> to vector<16x128xf32>
    %8 = arith.addf %5, %7 : vector<16x128xf32>
    %cst_5 = arith.constant 0.000000e+00 : f32
    %9 = vector.broadcast %cst_5 : f32 to vector<16x128xf32>
    %10 = arith.maximumf %8, %9 : vector<16x128xf32>
    %11 = arith.truncf %10 : vector<16x128xf32> to vector<16x128xbf16>
    %c0_6 = arith.constant 0 : index
    %c0_7 = arith.constant 0 : index
    %12 = vector.load %arg4[%c0_6, %c0_7] : memref<128x128xbf16, #tpu.memory_space<vmem>>, vector<128x128xbf16>
    %cst_8 = arith.constant dense<0.000000e+00> : vector<16x128xf32>
    %13 = tpu.matmul %11, %12, %cst_8 {dimension_numbers = #tpu.dot_dimension_numbers<[1], [0], [0], [1], [0, 0, 1, 1], [], []>} : vector<16x128xbf16>, vector<128x128xbf16>, vector<16x128xf32> -> vector<16x128xf32>
    %c0_9 = arith.constant 0 : index
    %c0_10 = arith.constant 0 : index
    %14 = vector.load %arg5[%c0_9, %c0_10] : memref<1x128xf32, #tpu.memory_space<vmem>>, vector<1x128xf32>
    %15 = vector.broadcast %14 : vector<1x128xf32> to vector<16x128xf32>
    %16 = arith.addf %13, %15 : vector<16x128xf32>
    %cst_11 = arith.constant 0.000000e+00 : f32
    %17 = vector.broadcast %cst_11 : f32 to vector<16x128xf32>
    %18 = arith.maximumf %16, %17 : vector<16x128xf32>
    %19 = arith.truncf %18 : vector<16x128xf32> to vector<16x128xbf16>
    %c0_12 = arith.constant 0 : index
    %c0_13 = arith.constant 0 : index
    %20 = vector.load %arg6[%c0_12, %c0_13] : memref<128x256xbf16, #tpu.memory_space<vmem>>, vector<128x256xbf16>
    %cst_14 = arith.constant dense<0.000000e+00> : vector<16x256xf32>
    %21 = tpu.matmul %19, %20, %cst_14 {dimension_numbers = #tpu.dot_dimension_numbers<[1], [0], [0], [1], [0, 0, 1, 1], [], []>} : vector<16x128xbf16>, vector<128x256xbf16>, vector<16x256xf32> -> vector<16x256xf32>
    %c0_15 = arith.constant 0 : index
    %c0_16 = arith.constant 0 : index
    %22 = vector.load %arg7[%c0_15, %c0_16] : memref<1x256xf32, #tpu.memory_space<vmem>>, vector<1x256xf32>
    %23 = vector.broadcast %22 : vector<1x256xf32> to vector<16x256xf32>
    %24 = arith.addf %21, %23 : vector<16x256xf32>
    %cst_17 = arith.constant 0.000000e+00 : f32
    %25 = vector.broadcast %cst_17 : f32 to vector<16x256xf32>
    %26 = arith.maximumf %24, %25 : vector<16x256xf32>
    %27 = arith.truncf %26 : vector<16x256xf32> to vector<16x256xbf16>
    %c0_18 = arith.constant 0 : index
    %c0_19 = arith.constant 0 : index
    %28 = vector.load %arg8[%c0_18, %c0_19] : memref<256x256xbf16, #tpu.memory_space<vmem>>, vector<256x256xbf16>
    %cst_20 = arith.constant dense<0.000000e+00> : vector<16x256xf32>
    %29 = tpu.matmul %27, %28, %cst_20 {dimension_numbers = #tpu.dot_dimension_numbers<[1], [0], [0], [1], [0, 0, 1, 1], [], []>} : vector<16x256xbf16>, vector<256x256xbf16>, vector<16x256xf32> -> vector<16x256xf32>
    %c0_21 = arith.constant 0 : index
    %c0_22 = arith.constant 0 : index
    %30 = vector.load %arg9[%c0_21, %c0_22] : memref<1x256xf32, #tpu.memory_space<vmem>>, vector<1x256xf32>
    %31 = vector.broadcast %30 : vector<1x256xf32> to vector<16x256xf32>
    %32 = arith.addf %29, %31 : vector<16x256xf32>
    %cst_23 = arith.constant 0.000000e+00 : f32
    %33 = vector.broadcast %cst_23 : f32 to vector<16x256xf32>
    %34 = arith.maximumf %32, %33 : vector<16x256xf32>
    %35 = arith.truncf %34 : vector<16x256xf32> to vector<16x256xbf16>
    %c0_24 = arith.constant 0 : index
    %c0_25 = arith.constant 0 : index
    %36 = vector.load %arg10[%c0_24, %c0_25] : memref<256x256xbf16, #tpu.memory_space<vmem>>, vector<256x256xbf16>
    %cst_26 = arith.constant dense<0.000000e+00> : vector<16x256xf32>
    %37 = tpu.matmul %35, %36, %cst_26 {dimension_numbers = #tpu.dot_dimension_numbers<[1], [0], [0], [1], [0, 0, 1, 1], [], []>} : vector<16x256xbf16>, vector<256x256xbf16>, vector<16x256xf32> -> vector<16x256xf32>
    %c0_27 = arith.constant 0 : index
    %c0_28 = arith.constant 0 : index
    %38 = vector.load %arg11[%c0_27, %c0_28] : memref<1x256xf32, #tpu.memory_space<vmem>>, vector<1x256xf32>
    %39 = vector.broadcast %38 : vector<1x256xf32> to vector<16x256xf32>
    %40 = arith.addf %37, %39 : vector<16x256xf32>
    %cst_29 = arith.constant 0.000000e+00 : f32
    %41 = vector.broadcast %cst_29 : f32 to vector<16x256xf32>
    %42 = arith.maximumf %40, %41 : vector<16x256xf32>
    %43 = arith.truncf %42 : vector<16x256xf32> to vector<16x256xbf16>
    %c0_30 = arith.constant 0 : index
    %c0_31 = arith.constant 0 : index
    %44 = vector.load %arg12[%c0_30, %c0_31] : memref<256x8xbf16, #tpu.memory_space<vmem>>, vector<256x8xbf16>
    %cst_32 = arith.constant dense<0.000000e+00> : vector<16x8xf32>
    %45 = tpu.matmul %43, %44, %cst_32 {dimension_numbers = #tpu.dot_dimension_numbers<[1], [0], [0], [1], [0, 0, 1, 1], [], []>} : vector<16x256xbf16>, vector<256x8xbf16>, vector<16x8xf32> -> vector<16x8xf32>
    %c0_33 = arith.constant 0 : index
    %c0_34 = arith.constant 0 : index
    %46 = vector.load %arg13[%c0_33, %c0_34] : memref<1x8xf32, #tpu.memory_space<vmem>>, vector<1x8xf32>
    %47 = vector.broadcast %46 : vector<1x8xf32> to vector<16x8xf32>
    %48 = arith.addf %45, %47 : vector<16x8xf32>
    %49 = vector.extract_strided_slice %48 {offsets = [0, 0], sizes = [16, 4], strides = [1, 1]} : vector<16x8xf32> to vector<16x4xf32>
    %50 = vector.extract_strided_slice %48 {offsets = [0, 4], sizes = [16, 4], strides = [1, 1]} : vector<16x8xf32> to vector<16x4xf32>
    %cst_35 = arith.constant 0.000000e+00 : f32
    %51 = vector.broadcast %cst_35 : f32 to vector<16x4xf32>
    %52 = arith.maximumf %50, %51 : vector<16x4xf32>
    %53 = math.absf %50 : vector<16x4xf32>
    %cst_36 = arith.constant 0.000000e+00 : f32
    %54 = vector.broadcast %cst_36 : f32 to vector<16x4xf32>
    %55 = arith.subf %54, %53 : vector<16x4xf32>
    %56 = math.exp %55 : vector<16x4xf32>
    %57 = math.log1p %56 : vector<16x4xf32>
    %58 = arith.addf %52, %57 : vector<16x4xf32>
    %cst_37 = arith.constant 9.99999974E-5 : f32
    %cst_38 = arith.constant 1.000000e+00 : f32
    %59 = vector.broadcast %cst_37 : f32 to vector<16x4xf32>
    %60 = arith.maximumf %59, %58 : vector<16x4xf32>
    %61 = vector.broadcast %cst_38 : f32 to vector<16x4xf32>
    %62 = arith.minimumf %61, %60 : vector<16x4xf32>
    %63 = arith.mulf %62, %3 : vector<16x4xf32>
    %64 = arith.addf %49, %63 : vector<16x4xf32>
    %cst_39 = arith.constant -5.000000e-01 : f32
    %65 = vector.broadcast %cst_39 : f32 to vector<16x4xf32>
    %66 = arith.mulf %65, %3 : vector<16x4xf32>
    %67 = arith.mulf %66, %3 : vector<16x4xf32>
    %68 = math.log %62 : vector<16x4xf32>
    %69 = arith.subf %67, %68 : vector<16x4xf32>
    %cst_40 = arith.constant 0.918938517 : f32
    %70 = vector.broadcast %cst_40 : f32 to vector<16x4xf32>
    %71 = arith.subf %69, %70 : vector<16x4xf32>
    %72 = math.tanh %64 : vector<16x4xf32>
    %cst_41 = arith.constant 2.000000e+00 : f32
    %73 = vector.broadcast %cst_41 : f32 to vector<16x4xf32>
    %74 = arith.mulf %72, %73 : vector<16x4xf32>
    %75 = math.tanh %74 : vector<16x4xf32>
    %76 = arith.mulf %75, %75 : vector<16x4xf32>
    %cst_42 = arith.constant 1.000000e+00 : f32
    %77 = vector.broadcast %cst_42 : f32 to vector<16x4xf32>
    %78 = arith.subf %77, %76 : vector<16x4xf32>
    %cst_43 = arith.constant 9.99999974E-5 : f32
    %79 = vector.broadcast %cst_43 : f32 to vector<16x4xf32>
    %80 = arith.addf %78, %79 : vector<16x4xf32>
    %81 = math.log %80 : vector<16x4xf32>
    %82 = arith.subf %71, %81 : vector<16x4xf32>
    %cst_44 = arith.constant dense<0.000000e+00> : vector<16xf32>
    %83 = vector.multi_reduction <add>, %82, %cst_44 [1] : vector<16x4xf32> to vector<16xf32>
    %84 = vector.shape_cast %83 : vector<16xf32> to vector<16x1xf32>
    %cst_45 = arith.constant 0.000000e+00 : f32
    %85 = vector.broadcast %cst_45 : f32 to vector<16x128xf32>
    %c0_46 = arith.constant 0 : index
    %c0_47 = arith.constant 0 : index
    %86 = vector.load %arg14[%c0_46, %c0_47] : memref<16x128xf32, #tpu.memory_space<vmem>>, vector<16x128xf32>
    tpu.vector_store %arg14[%c0_46, %c0_47], %85 {strides = array<i32>} : memref<16x128xf32, #tpu.memory_space<vmem>>, vector<16x128xf32>,
    %c0_48 = arith.constant 0 : index
    %c0_49 = arith.constant 0 : index
    %87 = vector.load %arg14[%c0_48, %c0_49] : memref<16x128xf32, #tpu.memory_space<vmem>>, vector<16x4xf32>
    tpu.vector_store %arg14[%c0_48, %c0_49], %74 {strides = array<i32>} : memref<16x128xf32, #tpu.memory_space<vmem>>, vector<16x4xf32>,
    %c0_50 = arith.constant 0 : index
    %c4 = arith.constant 4 : index
    %88 = vector.load %arg14[%c0_50, %c4] : memref<16x128xf32, #tpu.memory_space<vmem>>, vector<16x1xf32>
    tpu.vector_store %arg14[%c0_50, %c4], %84 {strides = array<i32>} : memref<16x128xf32, #tpu.memory_space<vmem>>, vector<16x1xf32>,
    return
  }
  func.func @transform_0(%arg0: i32) -> (i32, i32) {
    %c0_i32 = arith.constant 0 : i32
    %c0_i32_0 = arith.constant 0 : i32
    return %arg0, %c0_i32 : i32, i32
  }
  func.func @transform_1(%arg0: i32) -> (i32, i32) {
    %c0_i32 = arith.constant 0 : i32
    %c0_i32_0 = arith.constant 0 : i32
    %c0_i32_1 = arith.constant 0 : i32
    return %c0_i32, %c0_i32_0 : i32, i32
  }
  func.func @transform_2(%arg0: i32) -> (i32, i32) {
    %c0_i32 = arith.constant 0 : i32
    %c0_i32_0 = arith.constant 0 : i32
    %c0_i32_1 = arith.constant 0 : i32
    return %c0_i32, %c0_i32_0 : i32, i32
  }
  func.func @transform_3(%arg0: i32) -> (i32, i32) {
    %c0_i32 = arith.constant 0 : i32
    %c0_i32_0 = arith.constant 0 : i32
    %c0_i32_1 = arith.constant 0 : i32
    return %c0_i32, %c0_i32_0 : i32, i32
  }
  func.func @transform_4(%arg0: i32) -> (i32, i32) {
    %c0_i32 = arith.constant 0 : i32
    %c0_i32_0 = arith.constant 0 : i32
    %c0_i32_1 = arith.constant 0 : i32
    return %c0_i32, %c0_i32_0 : i32, i32
  }
  func.func @transform_5(%arg0: i32) -> (i32, i32) {
    %c0_i32 = arith.constant 0 : i32
    %c0_i32_0 = arith.constant 0 : i32
    %c0_i32_1 = arith.constant 0 : i32
    return %c0_i32, %c0_i32_0 : i32, i32
  }
  func.func @transform_6(%arg0: i32) -> (i32, i32) {
    %c0_i32 = arith.constant 0 : i32
    %c0_i32_0 = arith.constant 0 : i32
    %c0_i32_1 = arith.constant 0 : i32
    return %c0_i32, %c0_i32_0 : i32, i32
  }
  func.func @transform_7(%arg0: i32) -> (i32, i32) {
    %c0_i32 = arith.constant 0 : i32
    %c0_i32_0 = arith.constant 0 : i32
    %c0_i32_1 = arith.constant 0 : i32
    return %c0_i32, %c0_i32_0 : i32, i32
  }
  func.func @transform_8(%arg0: i32) -> (i32, i32) {
    %c0_i32 = arith.constant 0 : i32
    %c0_i32_0 = arith.constant 0 : i32
    %c0_i32_1 = arith.constant 0 : i32
    return %c0_i32, %c0_i32_0 : i32, i32
  }
  func.func @transform_9(%arg0: i32) -> (i32, i32) {
    %c0_i32 = arith.constant 0 : i32
    %c0_i32_0 = arith.constant 0 : i32
    %c0_i32_1 = arith.constant 0 : i32
    return %c0_i32, %c0_i32_0 : i32, i32
  }
  func.func @transform_10(%arg0: i32) -> (i32, i32) {
    %c0_i32 = arith.constant 0 : i32
    %c0_i32_0 = arith.constant 0 : i32
    %c0_i32_1 = arith.constant 0 : i32
    return %c0_i32, %c0_i32_0 : i32, i32
  }
  func.func @transform_11(%arg0: i32) -> (i32, i32) {
    %c0_i32 = arith.constant 0 : i32
    %c0_i32_0 = arith.constant 0 : i32
    %c0_i32_1 = arith.constant 0 : i32
    return %c0_i32, %c0_i32_0 : i32, i32
  }
  func.func @transform_12(%arg0: i32) -> (i32, i32) {
    %c0_i32 = arith.constant 0 : i32
    %c0_i32_0 = arith.constant 0 : i32
    %c0_i32_1 = arith.constant 0 : i32
    return %c0_i32, %c0_i32_0 : i32, i32
  }
  func.func @transform_13(%arg0: i32) -> (i32, i32) {
    %c0_i32 = arith.constant 0 : i32
    %c0_i32_0 = arith.constant 0 : i32
    return %arg0, %c0_i32 : i32, i32
  }
}

</mosaic_0001>

<bundles_post_ra>
// kernel: tpu_custom_call.1
= control target key start
LH: loop header
LB: loop body
LE: loop exit
PB: predicated region body
PF: predicated region fallthrough
CT: control target
= control target key end

     0   :  { %18 = vsyncpa [#allocation3], 0  ;;  %s1999_s0 = inlined_call_operand.vmem [shape: bf16[16,12], index: 0, kind: input, shape index: {}]   ;;  %s2000_s1 = inlined_call_operand.vmem [shape: bf16[8,128], index: 1, kind: input, shape index: {}]   ;;  %s2001_s2 = inlined_call_operand.vmem [shape: f32[1,128], index: 2, kind: input, shape index: {}]   ;;  %s2002_s3 = inlined_call_operand.hbm [shape: bf16[128,128], index: 3, kind: input, shape index: {}]   ;;  %s2003_s4 = inlined_call_operand.vmem [shape: f32[1,128], index: 4, kind: input, shape index: {}]   ;;  %s2004_s5 = inlined_call_operand.vmem [shape: bf16[128,256], index: 5, kind: input, shape index: {}]   ;;  %s2005_s6 = inlined_call_operand.vmem [shape: f32[1,256], index: 6, kind: input, shape index: {}]   ;;  %s2006_s7 = inlined_call_operand.hbm [shape: bf16[256,256], index: 7, kind: input, shape index: {}]   ;;  %s2007_s8 = inlined_call_operand.vmem [shape: f32[1,256], index: 8, kind: input, shape index: {}]   ;;  %s2008_s9 = inlined_call_operand.hbm [shape: bf16[256,256], index: 9, kind: input, shape index: {}]   ;;  %s2009_s10 = inlined_call_operand.vmem [shape: f32[1,256], index: 10, kind: input, shape index: {}]   ;;  %s2010_s11 = inlined_call_operand.vmem [shape: bf16[256,8], index: 11, kind: input, shape index: {}]   ;;  %s2011_s12 = inlined_call_operand.vmem [shape: f32[1,8], index: 12, kind: input, shape index: {}]   ;;  %s2012_s13 = inlined_call_operand.hbm [shape: f32[16,128], index: 13, kind: output, shape index: {}]  }
   0x1   :  { %19 = vsyncpa [#allocation6], 0 }
   0x2   :  { %20 = vsyncpa [#allocation4], 0  ;;  %s1702_s25 = smov [#allocation5]   ;;  %s1608_s29 = scalar_lea.hbm %s2006_s7, 4096 }
   0x3   :  { %s50_s26 = sshll.u32 %s1702_s25, 4  ;;  %p1609_p0 = scmp.ne.s32.totalorder %s2006_s7, %s1608_s29  ;;  %s51_s26 = int_to_ptr.vmem [resolvable:$true] %s50_s26 }
   0x4   :  { %p1612_p1 = scmp.lt.u32.totalorder %s1608_s29, %s2006_s7 }
   0x6   :  { %p1614_p2 = pnand %p1612_p1, %p1609_p0 }
   0x8   :  { %1617 = shalt.err (!%p1614_p2)
}
   0x9   :  { %s1618_s17 = scalar_lea.vmem %s51_s26, 4096  ;;  %p1623_p4 = scmp.lt.s32.totalorder %s51_s26, %s51_s26 }
   0xa   :  { %p1619_p3 = scmp.ne.s32.totalorder %s51_s26, %s1618_s17  ;;  %p1624_p5 = scmp.lt.s32.totalorder %s1618_s17, %s1618_s17 }
   0xc   :  { %p1625_p6 = por %p1624_p5, %p1623_p4 }
   0xe   :  { %p1626_p7 = pnand %p1625_p6, %p1619_p3 }
  0x10   :  { %1629 = shalt.err (!%p1626_p7)
}
  0x11   :  { %s1703_s18 = smov 128   ;;  %s1704_s19 = smov 8  }
  0x12   :  { %56 = dma.hbm_to_vmem [thread:$0]  %s2006_s7, 4096, %s51_s26, [#allocation6], %s1703_s18, %s1703_s18, %s1704_s19  }
  0x13   :  { %s1705_s22 = smov [#allocation2]   ;;  %s1630_s27 = scalar_lea.hbm %s2002_s3, 1024 }
  0x14   :  { %s32_s23 = sshll.u32 %s1705_s22, 4  ;;  %p1631_p8 = scmp.ne.s32.totalorder %s2002_s3, %s1630_s27  ;;  %s33_s23 = int_to_ptr.vmem [resolvable:$true] %s32_s23 }
  0x15   :  { %p1634_p9 = scmp.lt.u32.totalorder %s1630_s27, %s2002_s3 }
  0x17   :  { %p1636_p10 = pnand %p1634_p9, %p1631_p8 }
  0x19   :  { %1639 = shalt.err (!%p1636_p10)
}
  0x1a   :  { %s1640_s15 = scalar_lea.vmem %s33_s23, 1024  ;;  %p1645_p12 = scmp.lt.s32.totalorder %s33_s23, %s33_s23 }
  0x1b   :  { %p1641_p11 = scmp.ne.s32.totalorder %s33_s23, %s1640_s15  ;;  %p1646_p13 = scmp.lt.s32.totalorder %s1640_s15, %s1640_s15 }
  0x1d   :  { %p1647_p0 = por %p1646_p13, %p1645_p12 }
  0x1f   :  { %p1648_p1 = pnand %p1647_p0, %p1641_p11 }
  0x21   :  { %1651 = shalt.err (!%p1648_p1)
}
  0x22   :  { %s1706_s7 = smov 64   ;;  %s1707_s26 = smov 4  }
  0x23   :  { %38 = dma.hbm_to_vmem [thread:$0]  %s2002_s3, 1024, %s33_s23, [#allocation3], %s1706_s7, %s1706_s7, %s1707_s26  }
  0x24   :  { %s1708_s20 = smov [#allocation7]   ;;  %s1652_s25 = scalar_lea.hbm %s2008_s9, 4096 }
  0x25   :  { %s64_s21 = sshll.u32 %s1708_s20, 4  ;;  %p1653_p2 = scmp.ne.s32.totalorder %s2008_s9, %s1652_s25  ;;  %s65_s21 = int_to_ptr.vmem [resolvable:$true] %s64_s21 }
  0x26   :  { %p1656_p3 = scmp.lt.u32.totalorder %s1652_s25, %s2008_s9 }
  0x28   :  { %p1658_p4 = pnand %p1656_p3, %p1653_p2 }
  0x2a   :  { %1661 = shalt.err (!%p1658_p4)
}
  0x2b   :  { %s1662_s14 = scalar_lea.vmem %s65_s21, 4096  ;;  %p1667_p6 = scmp.lt.s32.totalorder %s65_s21, %s65_s21 }
  0x2c   :  { %p1663_p5 = scmp.ne.s32.totalorder %s65_s21, %s1662_s14  ;;  %p1668_p7 = scmp.lt.s32.totalorder %s1662_s14, %s1662_s14 }
  0x2e   :  { %p1669_p8 = por %p1668_p7, %p1667_p6 }
  0x30   :  { %p1670_p9 = pnand %p1669_p8, %p1663_p5 }
  0x32   :  { %1673 = shalt.err (!%p1670_p9)
}
  0x33   :  { %70 = dma.hbm_to_vmem [thread:$0]  %s2008_s9, 4096, %s65_s21, [#allocation6], %s1703_s18, %s1703_s18, %s1704_s19  }
  0x34   :  { %1696 = dma.done.wait [#allocation3], 1024  }
  0x35   :  { %1697 = vsyncadd [#allocation3], 4294966272 }
  0x36   :  { %1698 = dma.done.wait [#allocation6], 8192  }
  0x37   :  { %1699 = vsyncadd [#allocation6], 4294959104  ;;  %v1709_v0 = vmov 0.0   ;;  %vm1710_vm0 = vmmov 0   ;;  %vm108_vm1 = vcmask 1043456   ;;  %v1834_v2 = vld [vmem:[%s1999_s0] sm:$0xff]  }
  0x38   :  { %1394 = vmatprep.subr.bf16.mxu0 %v1709_v0  ;;  %1225 = vst [vmem:[#allocation8] sm:$0xff] %v1709_v0  ;;  %1226 = vst [vmem:[#allocation8 + $0x8] sm:$0xff] %v1709_v0  ;;  %1396 = vmatprep.mubr.msk.bf16.mxu0 %vm1710_vm0, %v1709_v0  ;;  %v91_v1 = vld [vmem:[%s2000_s1] sm:$0xf]  ;;  %vm104_vm2 = vcmask 64512   ;;  %v1440_v5 = vld [vmem:[#allocation2 + $0x8] sm:$0xff]  }
  0x39   :  { %1400 = vmatprep.subr.bf16.mxu1 %v1709_v0  ;;  %1416 = vmatprep.mubr.msk.bf16.mxu1 %vm1710_vm0, %v1709_v0  ;;  %v110_v3 = vsel %vm108_vm1, %v91_v1, 0  ;;  %v1439_v4 = vld [vmem:[#allocation2] sm:$0xff]   ;;  %v1441_v6 = vld [vmem:[#allocation2 + $0x10] sm:$0xff]   ;;  %v1442_v7 = vld [vmem:[#allocation2 + $0x18] sm:$0xff]   ;;  %v1711_v38 = vmov 0   ;;  %s1712_s24 = smov 124  }
  0x3a   :  { %1395 = vmatpush3.bf16.msra.mxu0 %v110_v3  ;;  %1401 = vmatpush3.bf16.msra.mxu1 %v1439_v4  ;;  %v1443_v8 = vld [vmem:[#allocation2 + $0x20] sm:$0xff]   ;;  %v1444_v9 = vld [vmem:[#allocation2 + $0x28] sm:$0xff]   ;;  %v1445_v10 = vld [vmem:[#allocation2 + $0x30] sm:$0xff]   ;;  %vm1218_vm5 = vcmask 31744   ;;  %vm1229_vm6 = vcmask 39968  }
  0x3b   :  { %1402 = vmatprep.subr.bf16.mxu1 %v1709_v0  ;;  %v1446_v11 = vld [vmem:[#allocation2 + $0x38] sm:$0xff]   ;;  %v1447_v12 = vld [vmem:[%s2004_s5] ss:$8 sps:$4 sm:$0xff]   ;;  %v1449_v13 = vld [vmem:[%s2004_s5 + $0x4] ss:$8 sps:$4 sm:$0xff]  }
  0x3c   :  { %v1452_v14 = vld [vmem:[%s2004_s5 + $0x14] ss:$8 sps:$4 sm:$0xff]   ;;  %379 = vmatprep.subr.bf16.mxu0 %v1449_v13  ;;  %v1450_v15 = vld [vmem:[%s2004_s5 + $0x10] ss:$8 sps:$4 sm:$0xff]   ;;  %v1455_v16 = vld [vmem:[%s2004_s5 + $0x24] ss:$8 sps:$4 sm:$0xff]  }
  0x3d   :  { %1397 = vmatmul.mubr.msk.bf16.vlgmr.msra.gmra.mrb[0].mxu0 %vm104_vm2, %v1834_v2  ;;  %v1453_v17 = vld [vmem:[%s2004_s5 + $0x20] ss:$8 sps:$4 sm:$0xff]   ;;  %v1458_v18 = vld [vmem:[%s2004_s5 + $0x34] ss:$8 sps:$4 sm:$0xff]   ;;  %v1456_v19 = vld [vmem:[%s2004_s5 + $0x30] ss:$8 sps:$4 sm:$0xff]  }
  0x3e   :  { %1403 = vmatpush3.bf16.msra.mxu1 %v1440_v5  ;;  %380 = vmatpush1.bf16.msra.mxu0 %v1447_v12  ;;  %v1461_v20 = vld [vmem:[%s2004_s5 + $0x44] ss:$8 sps:$4 sm:$0xff]   ;;  %v1459_v21 = vld [vmem:[%s2004_s5 + $0x40] ss:$8 sps:$4 sm:$0xff]   ;;  %v1464_v22 = vld [vmem:[%s2004_s5 + $0x54] ss:$8 sps:$4 sm:$0xff]  }
  0x3f   :  { %1404 = vmatprep.subr.bf16.mxu1 %v1709_v0  ;;  %381 = vmatprep.subr.bf16.mxu0 %v1452_v14  ;;  %v1462_v23 = vld [vmem:[%s2004_s5 + $0x50] ss:$8 sps:$4 sm:$0xff]   ;;  %v1250_v24 = vld [vmem:[%s2001_s2] ss:$0 sm:$0xff]  ;;  %v1467_v34 = vld [vmem:[%s2004_s5 + $0x64] ss:$8 sps:$4 sm:$0xff]  }
  0x40   :  { %v1465_v35 = vld [vmem:[%s2004_s5 + $0x60] ss:$8 sps:$4 sm:$0xff]   ;;  %v1470_v36 = vld [vmem:[%s2004_s5 + $0x74] ss:$8 sps:$4 sm:$0xff]   ;;  %v1468_v37 = vld [vmem:[%s2004_s5 + $0x70] ss:$8 sps:$4 sm:$0xff]   ;;  %411 = vmatprep.mubr.bf16.mxu0 %v1711_v38 }
  0x41   :  { %v1471_v39 = vld [vmem:[#allocation5] ss:$8 sps:$4 sm:$0xff]   ;;  %v1473_v40 = vld [vmem:[#allocation5 + $0x4] ss:$8 sps:$4 sm:$0xff]   ;;  %v1476_v41 = vld [vmem:[#allocation5 + $0x14] ss:$8 sps:$4 sm:$0xff]  }
  0x42   :  { %1405 = vmatpush3.bf16.msra.mxu1 %v1441_v6  ;;  %382 = vmatpush1.bf16.msra.mxu0 %v1450_v15  ;;  %v1474_v42 = vld [vmem:[#allocation5 + $0x10] ss:$8 sps:$4 sm:$0xff]   ;;  %v1479_v43 = vld [vmem:[#allocation5 + $0x24] ss:$8 sps:$4 sm:$0xff]   ;;  %v1477_v44 = vld [vmem:[#allocation5 + $0x20] ss:$8 sps:$4 sm:$0xff]  }
  0x43   :  { %1406 = vmatprep.subr.bf16.mxu1 %v1709_v0  ;;  %383 = vmatprep.subr.bf16.mxu0 %v1455_v16  ;;  %v1482_v45 = vld [vmem:[#allocation5 + $0x34] ss:$8 sps:$4 sm:$0xff]   ;;  %v1480_v46 = vld [vmem:[#allocation5 + $0x30] ss:$8 sps:$4 sm:$0xff]   ;;  %v1485_v47 = vld [vmem:[#allocation5 + $0x44] ss:$8 sps:$4 sm:$0xff]  }
  0x44   :  { %v1483_v48 = vld [vmem:[#allocation5 + $0x40] ss:$8 sps:$4 sm:$0xff]   ;;  %v1488_v49 = vld [vmem:[#allocation5 + $0x54] ss:$8 sps:$4 sm:$0xff]   ;;  %v1486_v50 = vld [vmem:[#allocation5 + $0x50] ss:$8 sps:$4 sm:$0xff]  }
  0x45   :  { %v1491_v51 = vld [vmem:[#allocation5 + $0x64] ss:$8 sps:$4 sm:$0xff]   ;;  %v1489_v52 = vld [vmem:[#allocation5 + $0x60] ss:$8 sps:$4 sm:$0xff]   ;;  %v1494_v53 = vld [vmem:[#allocation5 + $0x74] ss:$8 sps:$4 sm:$0xff]  }
  0x46   :  { %1407 = vmatpush3.bf16.msra.mxu1 %v1442_v7  ;;  %384 = vmatpush1.bf16.msra.mxu0 %v1453_v17  ;;  %v1492_v54 = vld [vmem:[#allocation5 + $0x70] ss:$8 sps:$4 sm:$0xff]   ;;  %v1497_v55 = vld [vmem:[#allocation5 + $0x84] ss:$8 sps:$4 sm:$0xff]   ;;  %v1495_v56 = vld [vmem:[#allocation5 + $0x80] ss:$8 sps:$4 sm:$0xff]  }
  0x47   :  { %1408 = vmatprep.subr.bf16.mxu1 %v1709_v0  ;;  %385 = vmatprep.subr.bf16.mxu0 %v1458_v18  ;;  %v1500_v57 = vld [vmem:[#allocation5 + $0x94] ss:$8 sps:$4 sm:$0xff]   ;;  %v1498_v58 = vld [vmem:[#allocation5 + $0x90] ss:$8 sps:$4 sm:$0xff]   ;;  %v1503_v59 = vld [vmem:[#allocation5 + $0xa4] ss:$8 sps:$4 sm:$0xff]  }
  0x48   :  { %v1501_v60 = vld [vmem:[#allocation5 + $0xa0] ss:$8 sps:$4 sm:$0xff]   ;;  %v1506_v61 = vld [vmem:[#allocation5 + $0xb4] ss:$8 sps:$4 sm:$0xff]   ;;  %v1504_v62 = vld [vmem:[#allocation5 + $0xb0] ss:$8 sps:$4 sm:$0xff]  }
  0x49   :  { %v1509_v63 = vld [vmem:[#allocation5 + $0xc4] ss:$8 sps:$4 sm:$0xff]   ;;  %v1512_v1 = vld [vmem:[#allocation5 + $0xd4] ss:$8 sps:$4 sm:$0xff]   ;;  %v1510_v3 = vld [vmem:[#allocation5 + $0xd0] ss:$8 sps:$4 sm:$0xff]  }
  0x4a   :  { %1409 = vmatpush3.bf16.msra.mxu1 %v1443_v8  ;;  %386 = vmatpush1.bf16.msra.mxu0 %v1456_v19  ;;  %v1253_v4 = vld [vmem:[%s2003_s4] ss:$0 sm:$0xff]  ;;  %v1515_v14 = vld [vmem:[#allocation5 + $0xe4] ss:$8 sps:$4 sm:$0xff]   ;;  %v1518_v16 = vld [vmem:[#allocation5 + $0xf4] ss:$8 sps:$4 sm:$0xff]  }
  0x4b   :  { %1410 = vmatprep.subr.bf16.mxu1 %v1709_v0  ;;  %387 = vmatprep.subr.bf16.mxu0 %v1461_v20  ;;  %v1513_v15 = vld [vmem:[#allocation5 + $0xe0] ss:$8 sps:$4 sm:$0xff]   ;;  %v1516_v17 = vld [vmem:[#allocation5 + $0xf0] ss:$8 sps:$4 sm:$0xff]   ;;  %v1521_v19 = vld [vmem:[#allocation7 + $0x4] ss:$8 sps:$4 sm:$0xff]  }
  0x4c   :  { %v1519_v18 = vld [vmem:[#allocation7] ss:$8 sps:$4 sm:$0xff]   ;;  %v1524_v20 = vld [vmem:[#allocation7 + $0x14] ss:$8 sps:$4 sm:$0xff]   ;;  %v1551_v38 = vld [vmem:[#allocation7 + $0xa4] ss:$8 sps:$4 sm:$0xff]  }
  0x4e   :  { %1411 = vmatpush3.bf16.msra.mxu1 %v1444_v9  ;;  %388 = vmatpush1.bf16.msra.mxu0 %v1459_v21  ;;  %v1522_v21 = vld [vmem:[#allocation7 + $0x10] ss:$8 sps:$4 sm:$0xff]  }
  0x4f   :  { %1412 = vmatprep.subr.bf16.mxu1 %v1709_v0  ;;  %389 = vmatprep.subr.bf16.mxu0 %v1464_v22  ;;  %v1527_v22 = vld [vmem:[#allocation7 + $0x24] ss:$8 sps:$4 sm:$0xff]  }
  0x52   :  { %1413 = vmatpush3.bf16.msra.mxu1 %v1445_v10  ;;  %390 = vmatpush1.bf16.msra.mxu0 %v1462_v23  ;;  %v1525_v23 = vld [vmem:[#allocation7 + $0x20] ss:$8 sps:$4 sm:$0xff]  }
  0x53   :  { %1414 = vmatprep.subr.bf16.mxu1 %v1709_v0  ;;  %391 = vmatprep.subr.bf16.mxu0 %v1467_v34  ;;  %v1507_v0 = vld [vmem:[#allocation5 + $0xc0] ss:$8 sps:$4 sm:$0xff]   ;;  %v1545_v34 = vld [vmem:[#allocation7 + $0x84] ss:$8 sps:$4 sm:$0xff]  }
  0x56   :  { %1415 = vmatpush3.bf16.msra.mxu1 %v1446_v11  ;;  %392 = vmatpush1.bf16.msra.mxu0 %v1465_v35  ;;  %v1543_v35 = vld [vmem:[#allocation7 + $0x80] ss:$8 sps:$4 sm:$0xff]  }
  0x57   :  { %393 = vmatprep.subr.bf16.mxu0 %v1470_v36  ;;  %632 = vmatprep.subr.bf16.mxu1 %v1473_v40  ;;  %v1548_v36 = vld [vmem:[#allocation7 + $0x94] ss:$8 sps:$4 sm:$0xff]  }
  0x58   :  { %v1554_v40 = vld [vmem:[#allocation7 + $0xb4] ss:$8 sps:$4 sm:$0xff]  }
  0x5a   :  { %394 = vmatpush1.bf16.msra.mxu0 %v1468_v37  ;;  %v1546_v37 = vld [vmem:[#allocation7 + $0x90] ss:$8 sps:$4 sm:$0xff]  }
  0x5b   :  { %885 = vmatprep.subr.bf16.mxu0 %v1521_v19  ;;  %v460_v19 = vld [vmem:[%s2007_s8] sm:$0x3] }
 0x110   :  { %v146_v25 = vpop.f32.mrb[0].mxu0 }
 0x111   :  { %v147_v26 = vadd.f32 %v1250_v24, %v146_v25  ;;  %v1398_v27 = vpop.f32.mrb[1].mxu0  ;;  %v1528_v25 = vld [vmem:[#allocation7 + $0x30] ss:$8 sps:$4 sm:$0xff]  }
 0x112   :  { %v149_v28 = vpop.f32.mrb[2].mxu0  ;;  %v1531_v27 = vld [vmem:[#allocation7 + $0x40] ss:$8 sps:$4 sm:$0xff]  }
 0x113   :  { %v150_v29 = vadd.f32 %v1250_v24, %v149_v28  ;;  %v1399_v30 = vpop.f32.mrb[3].mxu0  ;;  %v153_v31 = vmax.f32 %v147_v26, 0.0  ;;  %v1530_v24 = vld [vmem:[#allocation7 + $0x34] ss:$8 sps:$4 sm:$0xff]   ;;  %v1533_v26 = vld [vmem:[#allocation7 + $0x44] ss:$8 sps:$4 sm:$0xff]  }
 0x114   :  { %v1536_v28 = vld [vmem:[#allocation7 + $0x54] ss:$8 sps:$4 sm:$0xff]   ;;  %v1539_v30 = vld [vmem:[#allocation7 + $0x64] ss:$8 sps:$4 sm:$0xff]  }
 0x115   :  { %v154_v32 = vmax.f32 %v150_v29, 0.0  ;;  %v1534_v29 = vld [vmem:[#allocation7 + $0x50] ss:$8 sps:$4 sm:$0xff]  }
 0x117   :  { %v155_v33 = vpack.c.bf16 %v154_v32, %v153_v31  ;;  %v1537_v31 = vld [vmem:[#allocation7 + $0x60] ss:$8 sps:$4 sm:$0xff]   ;;  %v1542_v32 = vld [vmem:[#allocation7 + $0x74] ss:$8 sps:$4 sm:$0xff]  }
 0x119   :  { %1417 = vmatmul.mubr.bf16.vlgmr.msra.gmra.mrb[0].mxu1 %v155_v33  ;;  %v1540_v33 = vld [vmem:[#allocation7 + $0x70] ss:$8 sps:$4 sm:$0xff]  }
 0x11a   :  { %633 = vmatpush1.bf16.msra.mxu1 %v1471_v39  ;;  %v1549_v39 = vld [vmem:[#allocation7 + $0xa0] ss:$8 sps:$4 sm:$0xff]  }
 0x11b   :  { %634 = vmatprep.subr.bf16.mxu1 %v1476_v41  ;;  %v1552_v41 = vld [vmem:[#allocation7 + $0xb0] ss:$8 sps:$4 sm:$0xff]  }
 0x11e   :  { %635 = vmatpush1.bf16.msra.mxu1 %v1474_v42  ;;  %v1557_v42 = vld [vmem:[#allocation7 + $0xc4] ss:$8 sps:$4 sm:$0xff]  }
 0x11f   :  { %636 = vmatprep.subr.bf16.mxu1 %v1479_v43  ;;  %v1555_v43 = vld [vmem:[#allocation7 + $0xc0] ss:$8 sps:$4 sm:$0xff]  }
 0x122   :  { %637 = vmatpush1.bf16.msra.mxu1 %v1477_v44  ;;  %v1560_v44 = vld [vmem:[#allocation7 + $0xd4] ss:$8 sps:$4 sm:$0xff]  }
 0x123   :  { %638 = vmatprep.subr.bf16.mxu1 %v1482_v45  ;;  %v1558_v45 = vld [vmem:[#allocation7 + $0xd0] ss:$8 sps:$4 sm:$0xff]  }
 0x126   :  { %639 = vmatpush1.bf16.msra.mxu1 %v1480_v46  ;;  %v289_v46 = vlaneseq }
 0x127   :  { %640 = vmatprep.subr.bf16.mxu1 %v1485_v47 }
 0x128   :  { %v290_v47 = vshrl.u32 %v289_v46, 7 }
 0x12a   :  { %641 = vmatpush1.bf16.msra.mxu1 %v1483_v48  ;;  %v1891_v48 = vsub.s32 0, %v290_v47 }
 0x12b   :  { %642 = vmatprep.subr.bf16.mxu1 %v1488_v49  ;;  %v287_v49 = vld [vmem:[%s2005_s6] sm:$0x3] }
 0x12e   :  { %643 = vmatpush1.bf16.msra.mxu1 %v1486_v50  ;;  %v1896_v50 = vsub.s32 1, %v290_v47 }
 0x12f   :  { %644 = vmatprep.subr.bf16.mxu1 %v1491_v51  ;;  %v292_v51 = vrot.slane %v287_v49, %v1891_v48 }
 0x132   :  { %645 = vmatpush1.bf16.msra.mxu1 %v1489_v52  ;;  %v296_v52 = vrot.slane %v287_v49, %v1896_v50 }
 0x133   :  { %646 = vmatprep.subr.bf16.mxu1 %v1494_v53 }
 0x136   :  { %647 = vmatpush1.bf16.msra.mxu1 %v1492_v54 }
 0x137   :  { %648 = vmatprep.subr.bf16.mxu1 %v1497_v55 }
 0x13a   :  { %649 = vmatpush1.bf16.msra.mxu1 %v1495_v56 }
 0x13b   :  { %650 = vmatprep.subr.bf16.mxu1 %v1500_v57 }
 0x13e   :  { %651 = vmatpush1.bf16.msra.mxu1 %v1498_v58 }
 0x13f   :  { %652 = vmatprep.subr.bf16.mxu1 %v1503_v59 }
 0x142   :  { %653 = vmatpush1.bf16.msra.mxu1 %v1501_v60 }
 0x143   :  { %654 = vmatprep.subr.bf16.mxu1 %v1506_v61 }
 0x146   :  { %655 = vmatpush1.bf16.msra.mxu1 %v1504_v62 }
 0x147   :  { %656 = vmatprep.subr.bf16.mxu1 %v1509_v63 }
 0x14a   :  { %657 = vmatpush1.bf16.msra.mxu1 %v1507_v0 }
 0x14b   :  { %658 = vmatprep.subr.bf16.mxu1 %v1512_v1 }
 0x14e   :  { %659 = vmatpush1.bf16.msra.mxu1 %v1510_v3 }
 0x14f   :  { %660 = vmatprep.subr.bf16.mxu1 %v1515_v14  ;;  %v1573_v14 = vld [vmem:[%s2010_s11 + $0x58] sm:$0xff]  }
 0x152   :  { %661 = vmatpush1.bf16.msra.mxu1 %v1513_v15  ;;  %v1574_v15 = vld [vmem:[%s2010_s11 + $0x18] sm:$0xff]  }
 0x153   :  { %662 = vmatprep.subr.bf16.mxu1 %v1518_v16  ;;  %v1575_v16 = vld [vmem:[%s2010_s11 + $0x60] sm:$0xff]  }
 0x156   :  { %663 = vmatpush1.bf16.msra.mxu1 %v1516_v17  ;;  %v1576_v17 = vld [vmem:[%s2010_s11 + $0x20] sm:$0xff]  }
 0x1ec   :  { %v261_v5 = vpop.f32.mrb[0].mxu1 }
 0x1ed   :  { %v262_v6 = vadd.f32 %v1253_v4, %v261_v5  ;;  %v1418_v7 = vpop.f32.mrb[1].mxu1  ;;  %v1561_v5 = vld [vmem:[#allocation7 + $0xe0] ss:$8 sps:$4 sm:$0xff]  }
 0x1ee   :  { %v264_v8 = vpop.f32.mrb[2].mxu1  ;;  %v1564_v7 = vld [vmem:[#allocation7 + $0xf0] ss:$8 sps:$4 sm:$0xff]  }
 0x1ef   :  { %v265_v9 = vadd.f32 %v1253_v4, %v264_v8  ;;  %v1419_v10 = vpop.f32.mrb[3].mxu1  ;;  %v268_v11 = vmax.f32 %v262_v6, 0.0  ;;  %v1563_v4 = vld [vmem:[#allocation7 + $0xe4] ss:$8 sps:$4 sm:$0xff]   ;;  %v1566_v6 = vld [vmem:[#allocation7 + $0xf4] ss:$8 sps:$4 sm:$0xff]  }
 0x1f0   :  { %v1567_v8 = vld [vmem:[%s2010_s11 + $0x40] sm:$0xff]   ;;  %v1569_v10 = vld [vmem:[%s2010_s11 + $0x48] sm:$0xff]  }
 0x1f1   :  { %v269_v12 = vmax.f32 %v265_v9, 0.0  ;;  %v1568_v9 = vld [vmem:[%s2010_s11] sm:$0xff]   ;;  %1372 = vmatprep.subr.bf16.mxu1 %v1567_v8 }
 0x1f3   :  { %v270_v13 = vpack.c.bf16 %v269_v12, %v268_v11  ;;  %v1570_v11 = vld [vmem:[%s2010_s11 + $0x8] sm:$0xff]   ;;  %v1571_v12 = vld [vmem:[%s2010_s11 + $0x50] sm:$0xff]  }
 0x1f5   :  { %412 = vmatmul.mubr.bf16.vlgmr.msra.gmra.mrb[4].mxu0 %v270_v13  ;;  %v1572_v13 = vld [vmem:[%s2010_s11 + $0x10] sm:$0xff]  }
 0x1f6   :  { %886 = vmatpush1.bf16.msra.mxu0 %v1519_v18  ;;  %v1577_v18 = vld [vmem:[%s2010_s11 + $0x68] sm:$0xff]  }
 0x1f7   :  { %887 = vmatprep.subr.bf16.mxu0 %v1524_v20  ;;  %v465_v20 = vrot.slane %v460_v19, %v1891_v48 }
 0x1fa   :  { %888 = vmatpush1.bf16.msra.mxu0 %v1522_v21  ;;  %v469_v21 = vrot.slane %v460_v19, %v1896_v50 }
 0x1fb   :  { %889 = vmatprep.subr.bf16.mxu0 %v1527_v22 }
 0x1fe   :  { %890 = vmatpush1.bf16.msra.mxu0 %v1525_v23 }
 0x1ff   :  { %891 = vmatprep.subr.bf16.mxu0 %v1530_v24 }
 0x202   :  { %892 = vmatpush1.bf16.msra.mxu0 %v1528_v25 }
 0x203   :  { %893 = vmatprep.subr.bf16.mxu0 %v1533_v26 }
 0x206   :  { %894 = vmatpush1.bf16.msra.mxu0 %v1531_v27 }
 0x207   :  { %895 = vmatprep.subr.bf16.mxu0 %v1536_v28 }
 0x20a   :  { %896 = vmatpush1.bf16.msra.mxu0 %v1534_v29 }
 0x20b   :  { %897 = vmatprep.subr.bf16.mxu0 %v1539_v30 }
 0x20e   :  { %898 = vmatpush1.bf16.msra.mxu0 %v1537_v31 }
 0x20f   :  { %899 = vmatprep.subr.bf16.mxu0 %v1542_v32 }
 0x212   :  { %900 = vmatpush1.bf16.msra.mxu0 %v1540_v33 }
 0x213   :  { %901 = vmatprep.subr.bf16.mxu0 %v1545_v34 }
 0x216   :  { %902 = vmatpush1.bf16.msra.mxu0 %v1543_v35 }
 0x217   :  { %903 = vmatprep.subr.bf16.mxu0 %v1548_v36  ;;  %v1578_v36 = vld [vmem:[%s2010_s11 + $0x28] sm:$0xff]  }
 0x21a   :  { %904 = vmatpush1.bf16.msra.mxu0 %v1546_v37  ;;  %v1579_v37 = vld [vmem:[%s2010_s11 + $0x70] sm:$0xff]  }
 0x21b   :  { %905 = vmatprep.subr.bf16.mxu0 %v1551_v38  ;;  %v1580_v38 = vld [vmem:[%s2010_s11 + $0x30] sm:$0xff]  }
 0x21e   :  { %906 = vmatpush1.bf16.msra.mxu0 %v1549_v39  ;;  %v1581_v39 = vld [vmem:[%s2010_s11 + $0x78] sm:$0xff]  }
 0x21f   :  { %907 = vmatprep.subr.bf16.mxu0 %v1554_v40  ;;  %v1582_v40 = vld [vmem:[%s2010_s11 + $0x38] sm:$0xff]  }
 0x222   :  { %908 = vmatpush1.bf16.msra.mxu0 %v1552_v41  ;;  %v1954_v41 = vunpack.c.l.bf16 %v1834_v2 }
 0x223   :  { %909 = vmatprep.subr.bf16.mxu0 %v1557_v42  ;;  %v1957_v42 = vunpack.c.h.bf16 %v1834_v2 }
 0x226   :  { %910 = vmatpush1.bf16.msra.mxu0 %v1555_v43  ;;  %v1433_v43 = vpack.i.bf16 %v1957_v42, %v1954_v41 }
 0x227   :  { %911 = vmatprep.subr.bf16.mxu0 %v1560_v44  ;;  %v713_v44 = vld [vmem:[%s2009_s10] sm:$0x3] }
 0x228   :  { %1434 = vrot.lane.b32.xlu0 %v1433_v43, %s1712_s24  ;;  %v722_v46 = vrot.slane %v713_v44, %v1896_v50 }
 0x22a   :  { %912 = vmatpush1.bf16.msra.mxu0 %v1558_v45  ;;  %v718_v45 = vrot.slane %v713_v44, %v1891_v48  ;;  %v1342_v48 = vld [vmem:[%s2011_s12] ss:$0 sm:$0xff]  ;;  %s1713_s12 = smov 120  }
 0x22b   :  { %913 = vmatprep.subr.bf16.mxu0 %v1563_v4 }
 0x22e   :  { %914 = vmatpush1.bf16.msra.mxu0 %v1561_v5 }
 0x22f   :  { %915 = vmatprep.subr.bf16.mxu0 %v1566_v6 }
 0x232   :  { %916 = vmatpush1.bf16.msra.mxu0 %v1564_v7 }
 0x2c8   :  { %v413_v53 = vpop.f32.mrb[4].mxu0 }
 0x2c9   :  { %v414_v54 = vadd.f32 %v413_v53, %v292_v51  ;;  %v415_v55 = vpop.f32.mrb[5].mxu0 }
 0x2ca   :  { %v416_v56 = vadd.f32 %v415_v55, %v296_v52  ;;  %v417_v57 = vpop.f32.mrb[6].mxu0 }
 0x2cb   :  { %v418_v58 = vadd.f32 %v417_v57, %v292_v51  ;;  %v419_v59 = vpop.f32.mrb[7].mxu0  ;;  %v422_v61 = vmax.f32 %v414_v54, 0.0 }
 0x2cc   :  { %v420_v60 = vadd.f32 %v419_v59, %v296_v52  ;;  %v423_v63 = vmax.f32 %v416_v56, 0.0 }
 0x2cd   :  { %v424_v62 = vmax.f32 %v418_v58, 0.0 }
 0x2ce   :  { %v425_v0 = vmax.f32 %v420_v60, 0.0 }
 0x2cf   :  { %v426_v1 = vpack.c.bf16 %v424_v62, %v422_v61 }
 0x2d0   :  { %v427_v3 = vpack.c.bf16 %v425_v0, %v423_v63 }
 0x2d2   :  { %664 = vmatprep.mubr.bf16.mxu1 %v427_v3 }
 0x2d3   :  { %665 = vmatmul.mubr.bf16.vlgmr.msra.gmra.mrb[4].mxu1 %v426_v1 }
 0x2d4   :  { %1373 = vmatpush3.bf16.msra.mxu1 %v1568_v9 }
 0x2d5   :  { %1374 = vmatprep.subr.bf16.mxu1 %v1569_v10 }
 0x2d8   :  { %1375 = vmatpush3.bf16.msra.mxu1 %v1570_v11 }
 0x2d9   :  { %1376 = vmatprep.subr.bf16.mxu1 %v1571_v12 }
 0x2dc   :  { %1377 = vmatpush3.bf16.msra.mxu1 %v1572_v13 }
 0x2dd   :  { %1378 = vmatprep.subr.bf16.mxu1 %v1573_v14 }
 0x2e0   :  { %1379 = vmatpush3.bf16.msra.mxu1 %v1574_v15 }
 0x2e1   :  { %1380 = vmatprep.subr.bf16.mxu1 %v1575_v16 }
 0x2e4   :  { %1381 = vmatpush3.bf16.msra.mxu1 %v1576_v17 }
 0x2e5   :  { %1382 = vmatprep.subr.bf16.mxu1 %v1577_v18 }
 0x2e8   :  { %1383 = vmatpush3.bf16.msra.mxu1 %v1578_v36 }
 0x2e9   :  { %1384 = vmatprep.subr.bf16.mxu1 %v1579_v37 }
 0x2ec   :  { %1385 = vmatpush3.bf16.msra.mxu1 %v1580_v38 }
 0x2ed   :  { %1386 = vmatprep.subr.bf16.mxu1 %v1581_v39 }
 0x2f0   :  { %1387 = vmatpush3.bf16.msra.mxu1 %v1582_v40 }
 0x3a6   :  { %v666_v22 = vpop.f32.mrb[4].mxu1 }
 0x3a7   :  { %v667_v23 = vadd.f32 %v666_v22, %v465_v20  ;;  %v668_v24 = vpop.f32.mrb[5].mxu1 }
 0x3a8   :  { %v669_v25 = vadd.f32 %v668_v24, %v469_v21  ;;  %v670_v26 = vpop.f32.mrb[6].mxu1 }
 0x3a9   :  { %v671_v27 = vadd.f32 %v670_v26, %v465_v20  ;;  %v672_v28 = vpop.f32.mrb[7].mxu1  ;;  %v675_v30 = vmax.f32 %v667_v23, 0.0 }
 0x3aa   :  { %v673_v29 = vadd.f32 %v672_v28, %v469_v21  ;;  %v676_v32 = vmax.f32 %v669_v25, 0.0  ;;  %v1435_v28 = vpop.permute.xlu0 %1434 }
 0x3ab   :  { %v677_v31 = vmax.f32 %v671_v27, 0.0  ;;  %v1437_v38 = vunpack.i.h.bf16 %v1435_v28 }
 0x3ac   :  { %v678_v33 = vmax.f32 %v673_v29, 0.0 }
 0x3ad   :  { %v679_v34 = vpack.c.bf16 %v677_v31, %v675_v30 }
 0x3ae   :  { %v680_v35 = vpack.c.bf16 %v678_v33, %v676_v32 }
 0x3b0   :  { %917 = vmatprep.mubr.bf16.mxu0 %v680_v35  ;;  %v1436_v35 = vunpack.i.l.bf16 %v1435_v28 }
 0x3b1   :  { %918 = vmatmul.mubr.bf16.vlgmr.msra.gmra.mrb[8].mxu0 %v679_v34 }
 0x484   :  { %v919_v47 = vpop.f32.mrb[8].mxu0 }
 0x485   :  { %v920_v49 = vadd.f32 %v919_v47, %v718_v45  ;;  %v921_v51 = vpop.f32.mrb[9].mxu0 }
 0x486   :  { %v922_v52 = vadd.f32 %v921_v51, %v722_v46  ;;  %v923_v2 = vpop.f32.mrb[10].mxu0 }
 0x487   :  { %v924_v53 = vadd.f32 %v923_v2, %v718_v45  ;;  %v925_v54 = vpop.f32.mrb[11].mxu0  ;;  %v928_v56 = vmax.f32 %v920_v49, 0.0 }
 0x488   :  { %v926_v55 = vadd.f32 %v925_v54, %v722_v46  ;;  %v929_v58 = vmax.f32 %v922_v52, 0.0 }
 0x489   :  { %v930_v57 = vmax.f32 %v924_v53, 0.0 }
 0x48a   :  { %v931_v59 = vmax.f32 %v926_v55, 0.0 }
 0x48b   :  { %v932_v60 = vpack.c.bf16 %v930_v57, %v928_v56 }
 0x48c   :  { %v933_v61 = vpack.c.bf16 %v931_v59, %v929_v58 }
 0x48e   :  { %1101 = vmatprep.mubr.bf16.mxu1 %v933_v61 }
 0x48f   :  { %1102 = vmatmul.mubr.bf16.vlgmr.msra.gmra.mrb[8].mxu1 %v932_v60 }
 0x562   :  { %v1388_v62 = vpop.f32.mrb[8].mxu1 }
 0x563   :  { %v1389_v50 = vpop.f32.mrb[9].mxu1 }
 0x564   :  { %v1390_v63 = vadd.f32 %v1389_v50, %v1388_v62  ;;  %v1391_v0 = vpop.f32.mrb[10].mxu1 }
 0x565   :  { %v1392_v1 = vpop.f32.mrb[11].mxu1 }
 0x566   :  { %v1104_v3 = vadd.f32 %v1390_v63, %v1342_v48  ;;  %v1393_v4 = vadd.f32 %v1392_v1, %v1391_v0 }
 0x568   :  { %v1112_v5 = vand.u32 2147483647, %v1104_v3  ;;  %v1107_v6 = vadd.f32 %v1393_v4, %v1342_v48  ;;  %v1110_v26 = vmax.f32 %v1104_v3, 0.0 }
 0x56a   :  { %v1114_v7 = vsub.f32 0.0, %v1112_v5  ;;  %v1113_v8 = vand.u32 2147483647, %v1107_v6  ;;  %v1111_v32 = vmax.f32 %v1107_v6, 0.0  ;;  %v1164_v5 = vmul.f32 -0.5, %v1954_v41 }
 0x56c   :  { %v1116_v9 = vmul.f32 1.442695, %v1114_v7  ;;  %v1115_v10 = vsub.f32 0.0, %v1113_v8  ;;  %v1166_v7 = vmul.f32 %v1164_v5, %v1954_v41 }
 0x56e   :  { %1584 = vpow2.f32 %v1116_v9  ;;  %v1118_v11 = vmul.f32 1.442695, %v1115_v10 }
 0x570   :  { %1586 = vpow2.f32 %v1118_v11 }
 0x578   :  { %v1585_v12 = vpop.eup %1584 }
 0x579   :  { %v1120_v13 = vadd.f32 1.0, %v1585_v12  ;;  %v1123_v16 = vmul.f32 -0.5, %v1585_v12  ;;  %v1126_v19 = vand.u32 2147483647, %v1585_v12 }
 0x57a   :  { %v1587_v14 = vpop.eup %1586 }
 0x57b   :  { %1588 = vlog2.f32 %v1120_v13  ;;  %v1129_v15 = vadd.f32 1.0, %v1587_v14  ;;  %v1132_v17 = vmul.f32 -0.5, %v1587_v14  ;;  %v1124_v18 = vadd.f32 1.0, %v1123_v16 }
 0x57c   :  { %v1135_v22 = vand.u32 2147483647, %v1587_v14  ;;  %vm1127_vm3 = vcmp.lt.f32.partialorder %v1126_v19, 0.0004427343 }
 0x57d   :  { %1590 = vlog2.f32 %v1129_v15  ;;  %v1133_v20 = vadd.f32 1.0, %v1132_v17  ;;  %v1125_v24 = vmul.f32 %v1585_v12, %v1124_v18 }
 0x57e   :  { %vm1136_vm4 = vcmp.lt.f32.partialorder %v1135_v22, 0.0004427343 }
 0x57f   :  { %v1134_v30 = vmul.f32 %v1587_v14, %v1133_v20 }
 0x585   :  { %v1589_v21 = vpop.eup %1588 }
 0x586   :  { %v1122_v23 = vmul.f32 0.6931472, %v1589_v21 }
 0x587   :  { %v1591_v25 = vpop.eup %1590 }
 0x588   :  { %v1128_v27 = vsel %vm1127_vm3, %v1125_v24, %v1122_v23  ;;  %v1131_v29 = vmul.f32 0.6931472, %v1591_v25 }
 0x589   :  { %v1138_v31 = vadd.f32 %v1128_v27, %v1110_v26 }
 0x58a   :  { %v1137_v33 = vsel %vm1136_vm4, %v1134_v30, %v1131_v29 }
 0x58b   :  { %v1140_v34 = vmax.f32 %v1138_v31, 0.0001  ;;  %v1139_v36 = vadd.f32 %v1137_v33, %v1111_v32 }
 0x58d   :  { %v1142_v37 = vmin.f32 %v1140_v34, 1.0  ;;  %v1141_v39 = vmax.f32 %v1139_v36, 0.0001 }
 0x58f   :  { %v1152_v40 = vmul.f32 %v1436_v35, %v1142_v37  ;;  %v1143_v43 = vmin.f32 %v1141_v39, 1.0  ;;  %1592 = vlog2.f32 %v1142_v37 }
 0x591   :  { %1156 = vrot.lane.b32.xlu0 %v1152_v40, %s1712_s24  ;;  %v1153_v44 = vmul.f32 %v1437_v38, %v1143_v43  ;;  %1594 = vlog2.f32 %v1143_v43 }
 0x593   :  { %1158 = vrot.lane.b32.xlu1 %v1153_v44, %s1712_s24 }
 0x599   :  { %v1593_v45 = vpop.eup %1592 }
 0x59a   :  { %v1169_v46 = vmul.f32 0.6931472, %v1593_v45 }
 0x59b   :  { %v1595_v47 = vpop.eup %1594 }
 0x59c   :  { %1174 = vrot.lane.b32.xlu1 %v1169_v46, %s1707_s26  ;;  %v1171_v49 = vmul.f32 0.6931472, %v1595_v47 }
 0x59e   :  { %1176 = vrot.lane.b32.xlu0 %v1171_v49, %s1707_s26  ;;  %s1714_s26 = smov [#allocation8]  }
 0x59f   :  { %s1237_s28 = sshll.u32 %s1714_s26, 4  ;;  %s1238_s28 = int_to_ptr.vmem [resolvable:$true] %s1237_s28 }
 0x5a0   :  { %s1674_s29 = scalar_lea.vmem %s1238_s28, 256  ;;  %p1679_p11 = scmp.lt.s32.totalorder %s1238_s28, %s1238_s28 }
 0x5a1   :  { %p1675_p10 = scmp.ne.s32.totalorder %s1238_s28, %s1674_s29  ;;  %p1680_p12 = scmp.lt.s32.totalorder %s1674_s29, %s1674_s29 }
 0x5a3   :  { %p1681_p13 = por %p1680_p12, %p1679_p11 }
 0x5a5   :  { %p1682_p0 = pnand %p1681_p13, %p1675_p10 }
 0x603   :  { %v1157_v51 = vpop.permute.xlu0 %1156 }
 0x604   :  { %v1162_v52 = vadd.f32 %v1157_v51, %v1104_v3 }
 0x605   :  { %v1159_v2 = vpop.permute.xlu1 %1158 }
 0x606   :  { %1596 = vtanh.f32 %v1162_v52  ;;  %v1163_v53 = vadd.f32 %v1159_v2, %v1107_v6  ;;  %v1165_v6 = vmul.f32 -0.5, %v1957_v42 }
 0x608   :  { %1598 = vtanh.f32 %v1163_v53  ;;  %v1167_v9 = vmul.f32 %v1165_v6, %v1957_v42 }
 0x60e   :  { %v1175_v8 = vpop.permute.xlu1 %1174 }
 0x60f   :  { %v1180_v11 = vsub.f32 %v1166_v7, %v1175_v8 }
 0x610   :  { %v1597_v54 = vpop.eup %1596  ;;  %v1177_v10 = vpop.permute.xlu0 %1176 }
 0x611   :  { %v1186_v55 = vmul.f32 2.0, %v1597_v54  ;;  %v1181_v12 = vsub.f32 %v1167_v9, %v1177_v10  ;;  %v1359_v13 = vadd.f32 -0.9189385, %v1180_v11 }
 0x612   :  { %v1599_v56 = vpop.eup %1598 }
 0x613   :  { %1600 = vtanh.f32 %v1186_v55  ;;  %v1187_v57 = vmul.f32 2.0, %v1599_v56  ;;  %1227 = vst.msk [vmem:[#allocation8] sm:$0xff] %vm1218_vm5, %v1186_v55  ;;  %v1360_v15 = vadd.f32 -0.9189385, %v1181_v12 }
 0x615   :  { %1602 = vtanh.f32 %v1187_v57  ;;  %1228 = vst.msk [vmem:[#allocation8 + $0x8] sm:$0xff] %vm1218_vm5, %v1187_v57 }
 0x61d   :  { %v1601_v58 = vpop.eup %1600 }
 0x61e   :  { %v1190_v59 = vmul.f32 %v1601_v58, %v1601_v58 }
 0x61f   :  { %v1603_v60 = vpop.eup %1602 }
 0x620   :  { %v1192_v61 = vsub.f32 1.0, %v1190_v59  ;;  %v1191_v62 = vmul.f32 %v1603_v60, %v1603_v60 }
 0x622   :  { %v1194_v48 = vadd.f32 0.0001, %v1192_v61  ;;  %v1193_v50 = vsub.f32 1.0, %v1191_v62 }
 0x624   :  { %1604 = vlog2.f32 %v1194_v48  ;;  %v1195_v63 = vadd.f32 0.0001, %v1193_v50 }
 0x626   :  { %1606 = vlog2.f32 %v1195_v63 }
 0x62e   :  { %v1605_v0 = vpop.eup %1604 }
 0x62f   :  { %v1197_v1 = vmul.f32 0.6931472, %v1605_v0 }
 0x630   :  { %v1607_v3 = vpop.eup %1606 }
 0x631   :  { %1202 = vrot.lane.b32.xlu1 %v1197_v1, %s1704_s19  ;;  %v1199_v4 = vmul.f32 0.6931472, %v1607_v3 }
 0x633   :  { %1204 = vrot.lane.b32.xlu0 %v1199_v4, %s1704_s19 }
 0x6a3   :  { %v1203_v14 = vpop.permute.xlu1 %1202 }
 0x6a4   :  { %v1208_v16 = vsub.f32 %v1359_v13, %v1203_v14 }
 0x6a5   :  { %v1205_v17 = vpop.permute.xlu0 %1204 }
 0x6a6   :  { %v1209_v18 = vsub.f32 %v1360_v15, %v1205_v17  ;;  %1212 = vrot.lane.b32.xlu1 %v1208_v16, %s1713_s12 }
 0x6a8   :  { %1214 = vrot.lane.b32.xlu0 %v1209_v18, %s1713_s12 }
 0x718   :  { %v1213_v19 = vpop.permute.xlu1 %1212 }
 0x719   :  { %v1219_v20 = vsel %vm1218_vm5, %v1213_v19, 0.0 }
 0x71a   :  { %v1215_v21 = vpop.permute.xlu0 %1214  ;;  %1220 = vadd.xlane.f32.xlu1 %v1219_v20 }
 0x71b   :  { %v1222_v41 = vsel %vm1218_vm5, %v1215_v21, 0.0 }
 0x71c   :  { %1223 = vadd.xlane.f32.xlu0 %v1222_v41 }
 0x7a7   :  { %v1221_v42 = vpop.xlane.xlu1 %1220 }
 0x7a8   :  { %1230 = vst.msk [vmem:[#allocation8] sm:$0xff] %vm1229_vm6, %v1221_v42 }
 0x7a9   :  { %v1224_v22 = vpop.xlane.xlu0 %1223 }
 0x7aa   :  { %1231 = vst.msk [vmem:[#allocation8 + $0x8] sm:$0xff] %vm1229_vm6, %v1224_v22 }
 0x7ab   :  { %1685 = shalt.err (!%p1682_p0)
}
 0x7ac   :  { %s1686_s14 = scalar_lea.hbm %s2012_s13, 256 }
 0x7ad   :  { %p1687_p1 = scmp.ne.s32.totalorder %s2012_s13, %s1686_s14  ;;  %p1690_p2 = scmp.lt.u32.totalorder %s1686_s14, %s2012_s13 }
 0x7af   :  { %p1692_p3 = pnand %p1690_p2, %p1687_p1 }
 0x7b1   :  { %1695 = shalt.err (!%p1692_p3)
}
 0x7b2   :  { %1243 = dma.vmem_to_hbm [thread:$0]  %s1238_s28, 256, %s2012_s13, [#allocation4], %s1703_s18, %s1703_s18, %s1704_s19  }
 0x7b3   :  { %1700 = dma.done.wait [#allocation4], 256  }
 0x7b4   :  { %1701 = vsyncadd [#allocation4], 4294967040 }
 0x7b5   :  { %1247 = vsyncpa [#allocation3], 1 }
 0x7b6   :  { %1248 = vsyncpa [#allocation6], 1 }
 0x7b7   :  { %1249 = vsyncpa [#allocation4], 1 }

</bundles_post_ra>
